<compile_context>
chip_gen: v6e
topology: v6e:2x2x1
jax: 0.10.0
libtpu: 0.0.40
codegen_flags: <defaults>
</compile_context>

<pallas_src>
import functools

import jax
import jax.numpy as jnp
from jax.experimental import pallas as pl
from jax.experimental.pallas import tpu as pltpu

BN_EPS = 1e-5
LEAKY_SLOPE = 0.01  # PyTorch nn.LeakyReLU default


def _leaky_relu(x):
    return jnp.where(x > 0, x, LEAKY_SLOPE * x)


def _sigmoid(x):
    # Numerically stable sigmoid via tanh (runs on the EUP, no f32 exp overflow).
    return 0.5 * (jnp.tanh(0.5 * x) + 1.0)


def attention_net_kernel(
    bag_ref,                      # (N, L) f32   (leading bag axis squeezed by BlockSpec)
    w01_ref, b01_ref,             # fused first layers: (L, Di+Df) bf16, (1, Di+Df) f32
    w1_ref, b1_ref,               # instance branch (BN folded): (Di, Di) bf16, (1, Di) f32
    w2_ref, b2_ref,               # (Di, K) f32, (1, K) f32
    v1_ref, c1_ref,               # feature branch (BN folded): (Df, Df) bf16, (1, Df) f32
    v2_ref, c2_ref,               # (Df, L) bf16, (1, L) f32
    wc_ref,                       # classifier weight reshaped to (K, L) f32
    bc_ref,                       # (1, 1) f32 scalar in SMEM
    out_ref,                      # (1, 1) f32
    *, di, k,
):
    bag = bag_ref[...]                                        # (N, L) f32

    # Fused first layer feeding both branches: one (N,L) @ (L, Di+Df) matmul.
    hg = jnp.dot(bag.astype(jnp.bfloat16), w01_ref[...],
                 preferred_element_type=jnp.float32) + b01_ref[...]
    hg = _leaky_relu(hg)                                      # both branches start with LeakyReLU
    h = hg[:, :di]                                            # instance branch (N, Di)
    g = hg[:, di:]                                            # feature branch  (N, Df)

    # ---------------- instance attention: A = attention(bag) ----------------
    # Dropout (eval) = identity; BatchNorm1d folded into (w1, b1) in the wrapper.
    h = jnp.dot(h.astype(jnp.bfloat16), w1_ref[...],
                preferred_element_type=jnp.float32) + b1_ref[...]
    h = _leaky_relu(h)
    A = jnp.dot(h, w2_ref[...], preferred_element_type=jnp.float32) + b2_ref[...]  # (N, K)

    # transpose(A) then softmax over dim=1  <=>  softmax over N per column k.
    a_max = jnp.max(A, axis=0, keepdims=True)                 # (1, K)
    a_exp = jnp.exp(A - a_max)                                # (N, K)
    a_sum = jnp.sum(a_exp, axis=0, keepdims=True)             # (1, K)
    a_norm = a_exp * pl.reciprocal(a_sum, approx=True)        # (N, K), columns sum to 1

    # -------------- feature attention: sigmoid(feature_attention(bag)) -------
    g = jnp.dot(g.astype(jnp.bfloat16), v1_ref[...],
                preferred_element_type=jnp.float32) + c1_ref[...]
    g = g * _sigmoid(g)                                       # Swish (BN folded into v1/c1)
    g = jnp.dot(g.astype(jnp.bfloat16), v2_ref[...],
                preferred_element_type=jnp.float32) + c2_ref[...]
    feat_att = _sigmoid(g)                                    # (N, L)

    bag_gated = bag * feat_att                                # (N, L)

    # ------------------------- M = A^T @ bag_gated ---------------------------
    if k == 1:
        # Degenerate K=1 contraction: broadcast-mul + sublane reduce (VPU/XLU),
        # avoids an XLU transpose and a 1-row MXU matmul.
        M = jnp.sum(a_norm * bag_gated, axis=0, keepdims=True)            # (1, L)
    else:
        M = jnp.einsum("nk,nl->kl", a_norm, bag_gated,
                       preferred_element_type=jnp.float32)                # (K, L)

    # classifier: Dropout (eval) = identity; Linear(K*L, 1); sigmoid.
    # wc is pre-reshaped to (K, L) to match the row-major flatten of M, turning the
    # (1, K*L) relayout + 1x1 MXU matmul into an elementwise multiply + reduce.
    y = jnp.sum(M * wc_ref[...], axis=1, keepdims=True)       # (K, 1)
    y = jnp.sum(y, axis=0, keepdims=True) + bc_ref[0, 0]      # (1, 1)
    out_ref[...] = _sigmoid(y)


def _fold_bn_into_linear(w, b, bn):
    """Fold eval-mode BatchNorm1d (running stats + affine) into the preceding Linear."""
    scale = bn["gamma"] / jnp.sqrt(bn["var"] + BN_EPS)                       # (out,)
    w_f = w * scale[None, :]
    b_f = (b - bn["mean"][None, :]) * scale[None, :] + bn["beta"][None, :]
    return w_f, b_f


def attention_net_forward(batch_data, params):
    """Forward pass.

    batch_data: (B, N, L) batch of bags, (N, L) single bag, or (L,) single
                instance (duplicated to a 2-instance bag, as in the PyTorch code).
    Returns (B, 1) for batched input, (1,) otherwise (matching PyTorch's output).
    """
    single = batch_data.ndim != 3
    if batch_data.ndim == 1:
        batch_data = jnp.stack([batch_data, batch_data], axis=0)   # cat((bag, bag), 0)
    if batch_data.ndim == 2:
        batch_data = batch_data[None]
    bags = batch_data.astype(jnp.float32)
    B, N, L = bags.shape

    Di = params["w0"].shape[1]
    Df = params["v0"].shape[1]
    K = params["w2"].shape[1]

    # Fold eval-mode BatchNorm into the preceding Linear layers (exact).
    w1, b1 = _fold_bn_into_linear(params["w1"], params["b1"], params["bn1"])
    v1, c1 = _fold_bn_into_linear(params["v1"], params["c1"], params["bn2"])

    # Fuse the two first-layer weights into one (L, Di+Df) matmul operand.
    w01 = jnp.concatenate([params["w0"], params["v0"]], axis=1).astype(jnp.bfloat16)
    b01 = jnp.concatenate([params["b0"], params["c0"]], axis=1)

    # Big matmul weights in bf16 (f32 accumulation inside the kernel).
    w1 = w1.astype(jnp.bfloat16)
    v1 = v1.astype(jnp.bfloat16)
    v2 = params["v2"].astype(jnp.bfloat16)

    # Classifier weight reshaped to (K, L): row-major flatten of M (K, L) maps
    # flat index k*L + l  ->  wc.reshape(K, L)[k, l].
    wc2d = params["wc"].reshape(K, L).astype(jnp.float32)
    bc = params["bc"].reshape(1, 1).astype(jnp.float32)

    inputs = (
        bags,
        w01, b01,
        w1, b1,
        params["w2"], params["b2"],
        v1, c1,
        v2, params["c2"],
        wc2d, bc,
    )

    def const_spec(shape):
        # Whole array as one VMEM block; same block for every bag -> stays resident.
        return pl.BlockSpec(shape, lambda b, _s=shape: (0,) * len(_s))

    in_specs = [
        pl.BlockSpec((None, N, L), lambda b: (b, 0, 0)),        # one bag per grid step
        const_spec(w01.shape), const_spec(b01.shape),
        const_spec(w1.shape), const_spec(b1.shape),
        const_spec(params["w2"].shape), const_spec(params["b2"].shape),
        const_spec(v1.shape), const_spec(c1.shape),
        const_spec(v2.shape), const_spec(params["c2"].shape),
        const_spec(wc2d.shape),
        pl.BlockSpec((1, 1), lambda b: (0, 0),
                     memory_space=pltpu.MemorySpace.SMEM),      # bc scalar via SMEM
    ]
    out_specs = pl.BlockSpec((None, 1, 1), lambda b: (b, 0, 0))

    kernel = functools.partial(attention_net_kernel, di=Di, k=K)

    out = pl.pallas_call(
        kernel,
        out_shape=jax.ShapeDtypeStruct((B, 1, 1), jnp.float32),
        grid_spec=pltpu.PrefetchScalarGridSpec(
            num_scalar_prefetch=0,
            grid=(B,),
            in_specs=in_specs,
            out_specs=out_specs,
        ),
        compiler_params=pltpu.CompilerParams(
            dimension_semantics=("parallel",),   # bags are independent (megacore shard)
            vmem_limit_bytes=16 << 20,           # actual footprint is far smaller
        ),
    )(*inputs)

    out = out.reshape(B, 1)
    if single:
        out = out.reshape(1)
    return out


def init_params(key, L, Di, Df, K):
    """Deterministic synthetic init. Linear weights stored as (in, out); BatchNorm
    at PyTorch defaults (gamma=1, beta=0, running_mean=0, running_var=1)."""
    ks = jax.random.split(key, 8)

    def lin(k, fan_in, fan_out):
        kw, kb = jax.random.split(k)
        bound = 1.0 / jnp.sqrt(jnp.float32(fan_in))
        w = jax.random.uniform(kw, (fan_in, fan_out), jnp.float32, -bound, bound)
        b = jax.random.uniform(kb, (1, fan_out), jnp.float32, -bound, bound)
        return w, b

    def bn(dim):
        return {"gamma": jnp.ones((dim,), jnp.float32),
                "beta": jnp.zeros((dim,), jnp.float32),
                "mean": jnp.zeros((dim,), jnp.float32),
                "var": jnp.ones((dim,), jnp.float32)}

    p = {}
    # instance attention: Linear(L,Di) -> LeakyReLU -> [Dropout -> Linear(Di,Di) -> BN -> LeakyReLU] -> Linear(Di,K)
    p["w0"], p["b0"] = lin(ks[0], L, Di)
    p["w1"], p["b1"] = lin(ks[1], Di, Di)
    p["bn1"] = bn(Di)
    p["w2"], p["b2"] = lin(ks[2], Di, K)
    # feature attention: Linear(L,Df) -> LeakyReLU -> [Linear(Df,Df) -> BN -> Swish] -> Linear(Df,L)
    p["v0"], p["c0"] = lin(ks[3], L, Df)
    p["v1"], p["c1"] = lin(ks[4], Df, Df)
    p["bn2"] = bn(Df)
    p["v2"], p["c2"] = lin(ks[5], Df, L)
    # classifier: Dropout -> Linear(L*K, 1)
    p["wc"], p["bc"] = lin(ks[6], L * K, 1)
    return p


if __name__ == "__main__":
    # Small-but-consistent shapes: attentionL=256, instance_attention_dim=128,
    # feature_attention_dim=128, attentionK=1, bags of N=8 instances, B=4 bags.
    L, Di, Df, K = 256, 128, 128, 1
    N, B = 8, 4

    key = jax.random.PRNGKey(0)
    k_data, k_params = jax.random.split(key)

    params = init_params(k_params, L, Di, Df, K)
    batch_data = jax.random.normal(k_data, (B, N, L), dtype=jnp.float32)

    # Batched path: B independent bags in one pallas_call (grid over bags).
    y_batched = jax.block_until_ready(attention_net_forward(batch_data, params))
    assert y_batched.shape == (B, 1)
    assert bool(jnp.all(jnp.isfinite(y_batched)))

    # Single-bag path (PyTorch semantics: (1, N, L).squeeze(0) -> (N, L) -> (1,)).
    y_single = jax.block_until_ready(attention_net_forward(batch_data[0], params))
    assert y_single.shape == (1,)
    assert bool(jnp.all(jnp.isfinite(y_single)))
    assert bool(jnp.allclose(y_batched[0], y_single, rtol=1e-5, atol=1e-6))

    print("KERNEL_OK")
</pallas_src>

<mosaic_0001>
module attributes {stable_mosaic.version = 11 : i64} {
  func.func @attention_net_kernel(%arg0: i32, %arg1: memref<1x8x256xf32, #tpu.memory_space<vmem>>, %arg2: memref<256x256xbf16, #tpu.memory_space<vmem>>, %arg3: memref<1x256xf32, #tpu.memory_space<vmem>>, %arg4: memref<128x128xbf16, #tpu.memory_space<vmem>>, %arg5: memref<1x128xf32, #tpu.memory_space<vmem>>, %arg6: memref<128x1xf32, #tpu.memory_space<vmem>>, %arg7: memref<1x1xf32, #tpu.memory_space<vmem>>, %arg8: memref<128x128xbf16, #tpu.memory_space<vmem>>, %arg9: memref<1x128xf32, #tpu.memory_space<vmem>>, %arg10: memref<128x256xbf16, #tpu.memory_space<vmem>>, %arg11: memref<1x256xf32, #tpu.memory_space<vmem>>, %arg12: memref<1x256xf32, #tpu.memory_space<vmem>>, %arg13: memref<1x1xf32, #tpu.memory_space<smem>>, %arg14: memref<1x1x1xf32, #tpu.memory_space<vmem>>) attributes {dimension_semantics = [#tpu.dimension_semantics<parallel>], iteration_bounds = array<i64: 4>, scalar_prefetch = 0 : i64, scratch_operands = 0 : i64, tpu.core_type = #tpu.core_type<tc>, window_params = [{transform_indices = @transform_0, window_bounds = array<i64: 1, 8, 256>}, {pipeline_mode = #tpu.pipeline_mode<synchronous>, transform_indices = @transform_1, window_bounds = array<i64: 256, 256>}, {pipeline_mode = #tpu.pipeline_mode<synchronous>, transform_indices = @transform_2, window_bounds = array<i64: 1, 256>}, {pipeline_mode = #tpu.pipeline_mode<synchronous>, transform_indices = @transform_3, window_bounds = array<i64: 128, 128>}, {pipeline_mode = #tpu.pipeline_mode<synchronous>, transform_indices = @transform_4, window_bounds = array<i64: 1, 128>}, {pipeline_mode = #tpu.pipeline_mode<synchronous>, transform_indices = @transform_5, window_bounds = array<i64: 128, 1>}, {pipeline_mode = #tpu.pipeline_mode<synchronous>, transform_indices = @transform_6, window_bounds = array<i64: 1, 1>}, {pipeline_mode = #tpu.pipeline_mode<synchronous>, transform_indices = @transform_7, window_bounds = array<i64: 128, 128>}, {pipeline_mode = #tpu.pipeline_mode<synchronous>, transform_indices = @transform_8, window_bounds = array<i64: 1, 128>}, {pipeline_mode = #tpu.pipeline_mode<synchronous>, transform_indices = @transform_9, window_bounds = array<i64: 128, 256>}, {pipeline_mode = #tpu.pipeline_mode<synchronous>, transform_indices = @transform_10, window_bounds = array<i64: 1, 256>}, {pipeline_mode = #tpu.pipeline_mode<synchronous>, transform_indices = @transform_11, window_bounds = array<i64: 1, 256>}, {transform_indices = @transform_12, window_bounds = array<i64: 1, 1>}, {transform_indices = @transform_13, window_bounds = array<i64: 1, 1, 1>}]} {
    %c0 = arith.constant 0 : index
    %c0_0 = arith.constant 0 : index
    %c0_1 = arith.constant 0 : index
    %0 = vector.load %arg1[%c0, %c0_0, %c0_1] : memref<1x8x256xf32, #tpu.memory_space<vmem>>, vector<1x8x256xf32>
    %1 = vector.shape_cast %0 : vector<1x8x256xf32> to vector<8x256xf32>
    %2 = arith.truncf %1 : vector<8x256xf32> to vector<8x256xbf16>
    %c0_2 = arith.constant 0 : index
    %c0_3 = arith.constant 0 : index
    %3 = vector.load %arg2[%c0_2, %c0_3] : memref<256x256xbf16, #tpu.memory_space<vmem>>, vector<256x256xbf16>
    %cst = arith.constant dense<0.000000e+00> : vector<8x256xf32>
    %4 = tpu.matmul %2, %3, %cst {dimension_numbers = #tpu.dot_dimension_numbers<[1], [0], [0], [1], [0, 0, 1, 1], [], []>} : vector<8x256xbf16>, vector<256x256xbf16>, vector<8x256xf32> -> vector<8x256xf32>
    %c0_4 = arith.constant 0 : index
    %c0_5 = arith.constant 0 : index
    %5 = vector.load %arg3[%c0_4, %c0_5] : memref<1x256xf32, #tpu.memory_space<vmem>>, vector<1x256xf32>
    %6 = vector.broadcast %5 : vector<1x256xf32> to vector<8x256xf32>
    %7 = arith.addf %4, %6 : vector<8x256xf32>
    %cst_6 = arith.constant 0.000000e+00 : f32
    %8 = vector.broadcast %cst_6 : f32 to vector<8x256xf32>
    %9 = arith.cmpf ogt, %7, %8 : vector<8x256xf32>
    %cst_7 = arith.constant 0.00999999977 : f32
    %10 = vector.broadcast %cst_7 : f32 to vector<8x256xf32>
    %11 = arith.mulf %10, %7 : vector<8x256xf32>
    %12 = arith.select %9, %7, %11 : vector<8x256xi1>, vector<8x256xf32>
    %13 = vector.extract_strided_slice %12 {offsets = [0, 0], sizes = [8, 128], strides = [1, 1]} : vector<8x256xf32> to vector<8x128xf32>
    %14 = vector.extract_strided_slice %12 {offsets = [0, 128], sizes = [8, 128], strides = [1, 1]} : vector<8x256xf32> to vector<8x128xf32>
    %15 = arith.truncf %13 : vector<8x128xf32> to vector<8x128xbf16>
    %c0_8 = arith.constant 0 : index
    %c0_9 = arith.constant 0 : index
    %16 = vector.load %arg4[%c0_8, %c0_9] : memref<128x128xbf16, #tpu.memory_space<vmem>>, vector<128x128xbf16>
    %cst_10 = arith.constant dense<0.000000e+00> : vector<8x128xf32>
    %17 = tpu.matmul %15, %16, %cst_10 {dimension_numbers = #tpu.dot_dimension_numbers<[1], [0], [0], [1], [0, 0, 1, 1], [], []>} : vector<8x128xbf16>, vector<128x128xbf16>, vector<8x128xf32> -> vector<8x128xf32>
    %c0_11 = arith.constant 0 : index
    %c0_12 = arith.constant 0 : index
    %18 = vector.load %arg5[%c0_11, %c0_12] : memref<1x128xf32, #tpu.memory_space<vmem>>, vector<1x128xf32>
    %19 = vector.broadcast %18 : vector<1x128xf32> to vector<8x128xf32>
    %20 = arith.addf %17, %19 : vector<8x128xf32>
    %cst_13 = arith.constant 0.000000e+00 : f32
    %21 = vector.broadcast %cst_13 : f32 to vector<8x128xf32>
    %22 = arith.cmpf ogt, %20, %21 : vector<8x128xf32>
    %cst_14 = arith.constant 0.00999999977 : f32
    %23 = vector.broadcast %cst_14 : f32 to vector<8x128xf32>
    %24 = arith.mulf %23, %20 : vector<8x128xf32>
    %25 = arith.select %22, %20, %24 : vector<8x128xi1>, vector<8x128xf32>
    %c0_15 = arith.constant 0 : index
    %c0_16 = arith.constant 0 : index
    %26 = vector.load %arg6[%c0_15, %c0_16] : memref<128x1xf32, #tpu.memory_space<vmem>>, vector<128x1xf32>
    %cst_17 = arith.constant dense<0.000000e+00> : vector<8x1xf32>
    %27 = tpu.matmul %25, %26, %cst_17 {dimension_numbers = #tpu.dot_dimension_numbers<[1], [0], [0], [1], [0, 0, 1, 1], [], []>} : vector<8x128xf32>, vector<128x1xf32>, vector<8x1xf32> -> vector<8x1xf32>
    %c0_18 = arith.constant 0 : index
    %c0_19 = arith.constant 0 : index
    %28 = vector.load %arg7[%c0_18, %c0_19] : memref<1x1xf32, #tpu.memory_space<vmem>>, vector<1x1xf32>
    %29 = vector.broadcast %28 : vector<1x1xf32> to vector<8x1xf32>
    %30 = arith.addf %27, %29 : vector<8x1xf32>
    %cst_20 = arith.constant dense<0xFF800000> : vector<1xf32>
    %31 = vector.multi_reduction <maximumf>, %30, %cst_20 [0] : vector<8x1xf32> to vector<1xf32>
    %32 = vector.shape_cast %31 : vector<1xf32> to vector<1x1xf32>
    %33 = vector.broadcast %32 : vector<1x1xf32> to vector<8x1xf32>
    %34 = arith.subf %30, %33 : vector<8x1xf32>
    %35 = math.exp %34 : vector<8x1xf32>
    %cst_21 = arith.constant dense<0.000000e+00> : vector<1xf32>
    %36 = vector.multi_reduction <add>, %35, %cst_21 [0] : vector<8x1xf32> to vector<1xf32>
    %37 = vector.shape_cast %36 : vector<1xf32> to vector<1x1xf32>
    %38 = tpu.reciprocal %37 {approx = true} : vector<1x1xf32> -> vector<1x1xf32>
    %39 = vector.broadcast %38 : vector<1x1xf32> to vector<8x1xf32>
    %40 = arith.mulf %35, %39 : vector<8x1xf32>
    %41 = arith.truncf %14 : vector<8x128xf32> to vector<8x128xbf16>
    %c0_22 = arith.constant 0 : index
    %c0_23 = arith.constant 0 : index
    %42 = vector.load %arg8[%c0_22, %c0_23] : memref<128x128xbf16, #tpu.memory_space<vmem>>, vector<128x128xbf16>
    %cst_24 = arith.constant dense<0.000000e+00> : vector<8x128xf32>
    %43 = tpu.matmul %41, %42, %cst_24 {dimension_numbers = #tpu.dot_dimension_numbers<[1], [0], [0], [1], [0, 0, 1, 1], [], []>} : vector<8x128xbf16>, vector<128x128xbf16>, vector<8x128xf32> -> vector<8x128xf32>
    %c0_25 = arith.constant 0 : index
    %c0_26 = arith.constant 0 : index
    %44 = vector.load %arg9[%c0_25, %c0_26] : memref<1x128xf32, #tpu.memory_space<vmem>>, vector<1x128xf32>
    %45 = vector.broadcast %44 : vector<1x128xf32> to vector<8x128xf32>
    %46 = arith.addf %43, %45 : vector<8x128xf32>
    %cst_27 = arith.constant 5.000000e-01 : f32
    %47 = vector.broadcast %cst_27 : f32 to vector<8x128xf32>
    %48 = arith.mulf %47, %46 : vector<8x128xf32>
    %49 = math.tanh %48 : vector<8x128xf32>
    %cst_28 = arith.constant 1.000000e+00 : f32
    %50 = vector.broadcast %cst_28 : f32 to vector<8x128xf32>
    %51 = arith.addf %49, %50 : vector<8x128xf32>
    %cst_29 = arith.constant 5.000000e-01 : f32
    %52 = vector.broadcast %cst_29 : f32 to vector<8x128xf32>
    %53 = arith.mulf %52, %51 : vector<8x128xf32>
    %54 = arith.mulf %46, %53 : vector<8x128xf32>
    %55 = arith.truncf %54 : vector<8x128xf32> to vector<8x128xbf16>
    %c0_30 = arith.constant 0 : index
    %c0_31 = arith.constant 0 : index
    %56 = vector.load %arg10[%c0_30, %c0_31] : memref<128x256xbf16, #tpu.memory_space<vmem>>, vector<128x256xbf16>
    %cst_32 = arith.constant dense<0.000000e+00> : vector<8x256xf32>
    %57 = tpu.matmul %55, %56, %cst_32 {dimension_numbers = #tpu.dot_dimension_numbers<[1], [0], [0], [1], [0, 0, 1, 1], [], []>} : vector<8x128xbf16>, vector<128x256xbf16>, vector<8x256xf32> -> vector<8x256xf32>
    %c0_33 = arith.constant 0 : index
    %c0_34 = arith.constant 0 : index
    %58 = vector.load %arg11[%c0_33, %c0_34] : memref<1x256xf32, #tpu.memory_space<vmem>>, vector<1x256xf32>
    %59 = vector.broadcast %58 : vector<1x256xf32> to vector<8x256xf32>
    %60 = arith.addf %57, %59 : vector<8x256xf32>
    %cst_35 = arith.constant 5.000000e-01 : f32
    %61 = vector.broadcast %cst_35 : f32 to vector<8x256xf32>
    %62 = arith.mulf %61, %60 : vector<8x256xf32>
    %63 = math.tanh %62 : vector<8x256xf32>
    %cst_36 = arith.constant 1.000000e+00 : f32
    %64 = vector.broadcast %cst_36 : f32 to vector<8x256xf32>
    %65 = arith.addf %63, %64 : vector<8x256xf32>
    %cst_37 = arith.constant 5.000000e-01 : f32
    %66 = vector.broadcast %cst_37 : f32 to vector<8x256xf32>
    %67 = arith.mulf %66, %65 : vector<8x256xf32>
    %68 = arith.mulf %1, %67 : vector<8x256xf32>
    %69 = vector.broadcast %40 : vector<8x1xf32> to vector<8x256xf32>
    %70 = arith.mulf %69, %68 : vector<8x256xf32>
    %cst_38 = arith.constant dense<0.000000e+00> : vector<256xf32>
    %71 = vector.multi_reduction <add>, %70, %cst_38 [0] : vector<8x256xf32> to vector<256xf32>
    %72 = vector.shape_cast %71 : vector<256xf32> to vector<1x256xf32>
    %c0_39 = arith.constant 0 : index
    %c0_40 = arith.constant 0 : index
    %73 = vector.load %arg12[%c0_39, %c0_40] : memref<1x256xf32, #tpu.memory_space<vmem>>, vector<1x256xf32>
    %74 = arith.mulf %72, %73 : vector<1x256xf32>
    %cst_41 = arith.constant dense<0.000000e+00> : vector<1xf32>
    %75 = vector.multi_reduction <add>, %74, %cst_41 [1] : vector<1x256xf32> to vector<1xf32>
    %76 = vector.shape_cast %75 : vector<1xf32> to vector<1x1xf32>
    %cst_42 = arith.constant dense<0.000000e+00> : vector<1xf32>
    %77 = vector.multi_reduction <add>, %76, %cst_42 [0] : vector<1x1xf32> to vector<1xf32>
    %78 = vector.shape_cast %77 : vector<1xf32> to vector<1x1xf32>
    %c0_43 = arith.constant 0 : index
    %c0_44 = arith.constant 0 : index
    %79 = memref.load %arg13[%c0_43, %c0_44] : memref<1x1xf32, #tpu.memory_space<smem>>
    %80 = vector.broadcast %79 : f32 to vector<1x1xf32>
    %81 = arith.addf %78, %80 : vector<1x1xf32>
    %cst_45 = arith.constant 5.000000e-01 : f32
    %82 = vector.broadcast %cst_45 : f32 to vector<1x1xf32>
    %83 = arith.mulf %82, %81 : vector<1x1xf32>
    %84 = math.tanh %83 : vector<1x1xf32>
    %cst_46 = arith.constant 1.000000e+00 : f32
    %85 = vector.broadcast %cst_46 : f32 to vector<1x1xf32>
    %86 = arith.addf %84, %85 : vector<1x1xf32>
    %cst_47 = arith.constant 5.000000e-01 : f32
    %87 = vector.broadcast %cst_47 : f32 to vector<1x1xf32>
    %88 = arith.mulf %87, %86 : vector<1x1xf32>
    %c0_48 = arith.constant 0 : index
    %c0_49 = arith.constant 0 : index
    %c0_50 = arith.constant 0 : index
    %89 = vector.load %arg14[%c0_48, %c0_49, %c0_50] : memref<1x1x1xf32, #tpu.memory_space<vmem>>, vector<1x1x1xf32>
    %90 = vector.shape_cast %89 : vector<1x1x1xf32> to vector<1x1xf32>
    %91 = vector.shape_cast %88 : vector<1x1xf32> to vector<1x1x1xf32>
    tpu.vector_store %arg14[%c0_48, %c0_49, %c0_50], %91 {strides = array<i32>} : memref<1x1x1xf32, #tpu.memory_space<vmem>>, vector<1x1x1xf32>,
    return
  }
  func.func @transform_0(%arg0: i32) -> (i32, i32, i32) {
    %c0_i32 = arith.constant 0 : i32
    %c0_i32_0 = arith.constant 0 : i32
    %c0_i32_1 = arith.constant 0 : i32
    return %arg0, %c0_i32, %c0_i32_0 : i32, i32, i32
  }
  func.func @transform_1(%arg0: i32) -> (i32, i32) {
    %c0_i32 = arith.constant 0 : i32
    %c0_i32_0 = arith.constant 0 : i32
    %c0_i32_1 = arith.constant 0 : i32
    return %c0_i32, %c0_i32_0 : i32, i32
  }
  func.func @transform_2(%arg0: i32) -> (i32, i32) {
    %c0_i32 = arith.constant 0 : i32
    %c0_i32_0 = arith.constant 0 : i32
    %c0_i32_1 = arith.constant 0 : i32
    return %c0_i32, %c0_i32_0 : i32, i32
  }
  func.func @transform_3(%arg0: i32) -> (i32, i32) {
    %c0_i32 = arith.constant 0 : i32
    %c0_i32_0 = arith.constant 0 : i32
    %c0_i32_1 = arith.constant 0 : i32
    return %c0_i32, %c0_i32_0 : i32, i32
  }
  func.func @transform_4(%arg0: i32) -> (i32, i32) {
    %c0_i32 = arith.constant 0 : i32
    %c0_i32_0 = arith.constant 0 : i32
    %c0_i32_1 = arith.constant 0 : i32
    return %c0_i32, %c0_i32_0 : i32, i32
  }
  func.func @transform_5(%arg0: i32) -> (i32, i32) {
    %c0_i32 = arith.constant 0 : i32
    %c0_i32_0 = arith.constant 0 : i32
    %c0_i32_1 = arith.constant 0 : i32
    return %c0_i32, %c0_i32_0 : i32, i32
  }
  func.func @transform_6(%arg0: i32) -> (i32, i32) {
    %c0_i32 = arith.constant 0 : i32
    %c0_i32_0 = arith.constant 0 : i32
    %c0_i32_1 = arith.constant 0 : i32
    return %c0_i32, %c0_i32_0 : i32, i32
  }
  func.func @transform_7(%arg0: i32) -> (i32, i32) {
    %c0_i32 = arith.constant 0 : i32
    %c0_i32_0 = arith.constant 0 : i32
    %c0_i32_1 = arith.constant 0 : i32
    return %c0_i32, %c0_i32_0 : i32, i32
  }
  func.func @transform_8(%arg0: i32) -> (i32, i32) {
    %c0_i32 = arith.constant 0 : i32
    %c0_i32_0 = arith.constant 0 : i32
    %c0_i32_1 = arith.constant 0 : i32
    return %c0_i32, %c0_i32_0 : i32, i32
  }
  func.func @transform_9(%arg0: i32) -> (i32, i32) {
    %c0_i32 = arith.constant 0 : i32
    %c0_i32_0 = arith.constant 0 : i32
    %c0_i32_1 = arith.constant 0 : i32
    return %c0_i32, %c0_i32_0 : i32, i32
  }
  func.func @transform_10(%arg0: i32) -> (i32, i32) {
    %c0_i32 = arith.constant 0 : i32
    %c0_i32_0 = arith.constant 0 : i32
    %c0_i32_1 = arith.constant 0 : i32
    return %c0_i32, %c0_i32_0 : i32, i32
  }
  func.func @transform_11(%arg0: i32) -> (i32, i32) {
    %c0_i32 = arith.constant 0 : i32
    %c0_i32_0 = arith.constant 0 : i32
    %c0_i32_1 = arith.constant 0 : i32
    return %c0_i32, %c0_i32_0 : i32, i32
  }
  func.func @transform_12(%arg0: i32) -> (i32, i32) {
    %c0_i32 = arith.constant 0 : i32
    %c0_i32_0 = arith.constant 0 : i32
    %c0_i32_1 = arith.constant 0 : i32
    return %c0_i32, %c0_i32_0 : i32, i32
  }
  func.func @transform_13(%arg0: i32) -> (i32, i32, i32) {
    %c0_i32 = arith.constant 0 : i32
    %c0_i32_0 = arith.constant 0 : i32
    %c0_i32_1 = arith.constant 0 : i32
    return %arg0, %c0_i32, %c0_i32_0 : i32, i32, i32
  }
}

</mosaic_0001>

<bundles_post_ra>
// kernel: tpu_custom_call.1
= control target key start
LH: loop header
LB: loop body
LE: loop exit
PB: predicated region body
PF: predicated region fallthrough
CT: control target
= control target key end

     0   :  { %s2325_s0 = inlined_call_operand.hbm [shape: f32[4,8,256], index: 0, kind: input, shape index: {}]   ;;  %s2326_s1 = inlined_call_operand.hbm [shape: bf16[256,256], index: 1, kind: input, shape index: {}]   ;;  %s2327_s2 = inlined_call_operand.vmem [shape: f32[1,256], index: 2, kind: input, shape index: {}]   ;;  %s2328_s3 = inlined_call_operand.hbm [shape: bf16[128,128], index: 3, kind: input, shape index: {}]   ;;  %s2329_s4 = inlined_call_operand.vmem [shape: f32[1,128], index: 4, kind: input, shape index: {}]   ;;  %s2330_s5 = inlined_call_operand.vmem [shape: f32[128,1], index: 5, kind: input, shape index: {}]   ;;  %s2331_s6 = inlined_call_operand.<no memory space> [shape: f32[1,1], index: 6, kind: input, shape index: {}]   ;;  %s2332_s7 = inlined_call_operand.hbm [shape: bf16[128,128], index: 7, kind: input, shape index: {}]   ;;  %s2333_s8 = inlined_call_operand.vmem [shape: f32[1,128], index: 8, kind: input, shape index: {}]   ;;  %s2334_s9 = inlined_call_operand.vmem [shape: bf16[128,256], index: 9, kind: input, shape index: {}]   ;;  %s2335_s10 = inlined_call_operand.vmem [shape: f32[1,256], index: 10, kind: input, shape index: {}]   ;;  %s2336_s11 = inlined_call_operand.vmem [shape: f32[1,256], index: 11, kind: input, shape index: {}]   ;;  %s2337_s12 = inlined_call_operand.<no memory space> [shape: f32[1,1], index: 12, kind: input, shape index: {}]   ;;  %s2338_s13 = inlined_call_operand.vmem [shape: f32[4,1,1], index: 13, kind: output, shape index: {}]  }
   0x1   :  { %2342 = sst [smem:[#allocation14_spill]] %s2326_s1  ;;  %v18_v0 = vstv %s2331_s6 }
   0x2   :  { %2343 = sst [smem:[#allocation15_spill]] %s2328_s3  ;;  %19 = vst [vmem:[#allocation2] sm:$0x1] %v18_v0 }
   0x3   :  { %20 = sst [smem:[#allocation3]] %s2337_s12 }
   0x4   :  { %21 = vsyncpa [#allocation5], 0 }
   0x5   :  { %23 = vsyncpa [#allocation5 + $0x1], 0 }
   0x6   :  { %24 = vsyncpa [#allocation7], 0 }
   0x7   :  { %25 = vsyncpa [#allocation10], 0  ;;  %s2009_s29 = smov 0   ;;  %s2011_s30 = smov 0  }
   0x8   :  { %s2013_s14 = smov 0   ;;  %s2015_s15 = smov 0  }
   0x9 LB: > { %s2028_s6 = sadd.s32 4294967295, %s1920_s15   ;;  %p51_p0 = scmp.ne.s32.totalorder %s1912_s30, %s1908_s29  ;;  %s1920_s15 = sphi %s2015_s15, %s2359_s15   ;;  %s1916_s14 = sphi %s2013_s14, %s2358_s14   ;;  %s1912_s30 = sphi %s2011_s30, %s2357_s30   ;;  %s1908_s29 = sphi %s2009_s29, %s2356_s29  }
   0xa   : > { %p2339_p1 = scmp.eq.s32.totalorder %s2028_s6, 0  ;;  %p1401_p2 = scmp.ge.s32.totalorder %s1920_s15, 1 }
   0xb   : > { %p340_p3 = scmp.lt.s32.totalorder %s1920_s15, 5  ;;  %s1922_s17 = smov [#allocation6]  }
   0xc   : > { %p2036_p4 = por %p2339_p1, %p51_p0  ;;  %s352_s18 = sshll.u32 %s1922_s17, 4  ;;  %s353_s18 = int_to_ptr.vmem [resolvable:$true] %s352_s18 }
   0xd   : > { %p2040_p5 = pnand %p1401_p2, %p340_p3  ;;  %s1923_s20 = smov [#allocation8]  }
   0xe   : > { %s2344_s12 = scalar_select %p2036_p4, 1, 0 }
   0xf   : > { %s2345_s16 = scalar_select %p2040_p5, 1, 0 }
  0x10   : > { %p1608_p6 = pneg %p2040_p5  ;;  %s368_s21 = sshll.u32 %s1923_s20, 4  ;;  %s369_s21 = int_to_ptr.vmem [resolvable:$true] %s368_s21 }
  0x11   : > { %s1783_s22 = scalar_lea.vmem %s353_s18, 4096  ;;  %p1791_p12 = scmp.lt.s32.totalorder %s353_s18, %s353_s18 }
  0x12   : > { %p2048_p7 = pnand %p1608_p6, %p2339_p1  ;;  %p1784_p9 = scmp.ne.s32.totalorder %s353_s18, %s1783_s22 }
  0x13   : > { %p1792_p13 = scmp.lt.s32.totalorder %s1783_s22, %s1783_s22 }
  0x14   : > { %p1774_p8 = pneg %p2048_p7 }
  0x15   : > { %p1793_p0 = por %p1792_p13, %p1791_p12 }
  0x16   : > { %p1786_p10 = pnand %p1784_p9, %p1774_p8 }
  0x18   : > { %p1787_p11 = pneg %p1786_p10 }
  0x1a   : > { %p1794_p2 = pnand %p1793_p0, %p1787_p11 }
  0x1c   : > { %1797 = shalt.err (!%p1794_p2)
}
  0x1d   : > { %s1924_s23 = smov 128   ;;  %s1925_s24 = smov 8  }
  0x1e   : > { %s2347_s1 = sld [smem:[#allocation14_spill]]  ;;  %s1809_s27 = scalar_lea.vmem %s369_s21, 1024 }
  0x1f   : > { %p1810_p3 = scmp.ne.s32.totalorder %s369_s21, %s1809_s27  ;;  %p1817_p10 = scmp.lt.s32.totalorder %s369_s21, %s369_s21 }
  0x20   : > { %p1818_p1 = scmp.lt.s32.totalorder %s1809_s27, %s1809_s27 }
  0x21   : > { %p1812_p6 = pnand %p1810_p3, %p1774_p8 }
  0x22   : > { %p1819_p12 = por %p1818_p1, %p1817_p10 }
  0x23   : > { %p1813_p9 = pneg %p1812_p6 }
  0x24   : > { %1611 = dma.hbm_to_vmem [thread:$0]  (!%p2048_p7), %s2347_s1, 4096, %s353_s18, [#allocation7], %s1924_s23, %s1924_s23, %s1925_s24  }
  0x25   : > { %p1820_p11 = pnand %p1819_p12, %p1813_p9 }
  0x27   : > { %1823 = shalt.err (!%p1820_p11)
}
  0x28   : > { %s1926_s28 = smov 64   ;;  %s1927_s29 = smov 4  }
  0x29   : > { %s2348_s3 = sld [smem:[#allocation15_spill]]  ;;  %s1928_s18 = smov [#allocation9]  }
  0x2a   : > { %s390_s22 = sshll.u32 %s1928_s18, 4  ;;  %s2071_s23 = sadd.s32 1, %s1920_s15   ;;  %s391_s22 = int_to_ptr.vmem [resolvable:$true] %s390_s22 }
  0x2b   : > { %s1835_s24 = scalar_lea.vmem %s391_s22, 1024  ;;  %p1843_p2 = scmp.lt.s32.totalorder %s391_s22, %s391_s22 }
  0x2c   : > { %p1836_p13 = scmp.ne.s32.totalorder %s391_s22, %s1835_s24  ;;  %p1844_p3 = scmp.lt.s32.totalorder %s1835_s24, %s1835_s24 }
  0x2e   : > { %p1838_p1 = pnand %p1836_p13, %p1774_p8  ;;  %p1845_p6 = por %p1844_p3, %p1843_p2 }
  0x2f   : > { %1614 = dma.hbm_to_vmem [thread:$0]  (!%p2048_p7), %s2348_s3, 1024, %s369_s21, [#allocation7], %s1926_s28, %s1926_s28, %s1927_s29  }
  0x30   : > { %p1839_p0 = pneg %p1838_p1 }
  0x32   : > { %p1846_p9 = pnand %p1845_p6, %p1839_p0 }
  0x34   : > { %1849 = shalt.err (!%p1846_p9)
}
  0x35   : > { %1617 = dma.hbm_to_vmem [thread:$0]  (!%p2048_p7), %s2332_s7, 1024, %s391_s22, [#allocation10], %s1926_s28, %s1926_s28, %s1927_s29  }
  0x36   : > { %s35_s26 = ssub.s32 %s1920_s15, %s2071_s23  ;;  %s38_s27 = sadd.s32 1, %s1916_s14 }
  0x37   : > { %p36_p8 = scmp.eq.s32.totalorder %s35_s26, 0  ;;  %p45_p10 = scmp.ne.s32.totalorder %s1916_s14, %s1912_s30 }
  0x38   : > { %p46_p12 = scmp.eq.s32.totalorder %s1920_s15, 0  ;;  %p1625_p11 = scmp.lt.s32.totalorder %s1920_s15, 4 }
  0x39   : > { %s2089_s19 = scalar_select %p36_p8, %s1916_s14, %s38_s27  }
  0x3a   : > { %p47_p13 = por %p46_p12, %p45_p10  ;;  %s419_s17 = sand.u32 1, %s1916_s14  }
  0x3b   : > { %s1406_s20 = sshll.u32 %s419_s17, 4  ;;  %s1483_s18 = sshll.u32 %s1920_s15, 8 }
  0x3c   : > { %s2096_s21 = scalar_lea.hbm %s2325_s0, %s1483_s18  ;;  %s423_s28 = scalar_lea.vmem [#allocation4], %s1406_s20 }
  0x3d   : > { %s431_s29 = sshll.u32 %s423_s28, 4  ;;  %p2098_p7 = pnand %p1625_p11, %p47_p13  ;;  %s432_s29 = int_to_ptr.vmem [resolvable:$true] %s431_s29 }
  0x3e   : > { %s420_s26 = scalar_lea.sflag [#allocation5], %s419_s17  ;;  %s1850_s27 = scalar_lea.hbm %s2096_s21, 256 }
  0x3f   : > { %p1851_p1 = scmp.ne.s32.totalorder %s2096_s21, %s1850_s27  ;;  %p1852_p0 = pneg %p2098_p7 }
  0x40   : > { %s1855_s24 = scalar_lea.hbm %s2325_s0, 1024  ;;  %p1856_p6 = scmp.lt.s32.totalorder %s2096_s21, %s2325_s0 }
  0x41   : > { %p1853_p2 = pnand %p1852_p0, %p1851_p1  ;;  %p1857_p9 = scmp.lt.s32.totalorder %s1855_s24, %s1850_s27 }
  0x43   : > { %p1854_p3 = pneg %p1853_p2  ;;  %p1858_p8 = por %p1857_p9, %p1856_p6 }
  0x45   : > { %p1859_p10 = pnand %p1858_p8, %p1854_p3 }
  0x47   : > { %1862 = shalt.err (!%p1859_p10)
}
  0x48   : > { %s1863_s28 = scalar_lea.vmem %s432_s29, 256  ;;  %s1929_s17 = smov [#allocation4]  }
  0x49   : > { %p1864_p12 = scmp.ne.s32.totalorder %s432_s29, %s1863_s28  ;;  %s1868_s1 = sshll.u32 %s1929_s17, 4  ;;  %s1869_s1 = int_to_ptr.vmem [resolvable:$false] %s1868_s1 }
  0x4a   : > { %s1870_s3 = scalar_lea.vmem %s1869_s1, 512  ;;  %p1871_p1 = scmp.lt.s32.totalorder %s432_s29, %s1869_s1 }
  0x4b   : > { %p1866_p11 = pnand %p1864_p12, %p1852_p0  ;;  %p1872_p2 = scmp.lt.s32.totalorder %s1870_s3, %s1863_s28 }
  0x4d   : > { %p1867_p13 = pneg %p1866_p11  ;;  %p1873_p4 = por %p1872_p2, %p1871_p1 }
  0x4f   : > { %p1874_p5 = pnand %p1873_p4, %p1867_p13 }
  0x51   : > { %1877 = shalt.err (!%p1874_p5)
}
  0x52   : > { %1621 = dma.hbm_to_vmem [thread:$0]  (!%p2098_p7), %s2096_s21, 256, %s432_s29, %s420_s26  }
  0x53   : > { %p2350_p3 = scmp.ne.s32.totalorder %s2345_s16, 0 }
  0x54   : > { %s442_s27 = sand.u32 (!%p2350_p3), 1, %s1912_s30   ;;  %p2351_p0 = scmp.ne.s32.totalorder (!%p2350_p3), %s2344_s12, 0 }
  0x55   : > { %440 = sbr.rel (%p2350_p3) target bundleno = 1119 (0x45f), region = 72  ;;  %s2119_s15 = sshll.u32 (!%p2350_p3), %s442_s27, 4 }
  0x56   : > { %s443_s18 = scalar_lea.sflag (!%p2350_p3), [#allocation5], %s442_s27  ;;  %s446_s24 = scalar_lea.vmem (!%p2350_p3), [#allocation4], %s2119_s15 }
  0x5a   : > { %1895 = dma.done.wait (%p2351_p0), %s443_s18, 256  }
  0x5b   : > { %1897 = vsyncadd (%p2351_p0), %s443_s18, 4294967040  ;;  %p2352_p4 = scmp.eq.s32.totalorder %s2028_s6, 0 }
  0x5d   : > { %1899 = dma.done.wait (%p2352_p4), [#allocation7], 5120   ;;  %p2353_p5 = pmov %p2352_p4 }
  0x5e   : > { %p2354_p7 = pmov %p2352_p4 }
  0x5f   : > { %1901 = vsyncadd (%p2353_p5), [#allocation7], 4294962176 }
  0x60   : > { %1903 = dma.done.wait (%p2354_p7), [#allocation10], 1024   ;;  %p2355_p6 = pmov %p2352_p4 }
  0x61   : > { %v1930_v1 = vmov 0.0   ;;  %v1672_v2 = vld [vmem:[#allocation6 + $0x74] ss:$8 sps:$4 sm:$0xff]   ;;  %v1674_v3 = vld [vmem:[#allocation6 + $0x70] ss:$8 sps:$4 sm:$0xff]   ;;  %v1724_v23 = vld [vmem:[#allocation8 + $0x28] sm:$0xff]   ;;  %v541_v54 = vlaneseq }
  0x62   : > { %1905 = vsyncadd (%p2355_p6), [#allocation10], 4294966272  ;;  %1519 = vmatprep.subr.bf16.mxu1 %v1930_v1  ;;  %711 = vmatprep.subr.bf16.mxu0 %v1672_v2  ;;  %v1675_v4 = vld [vmem:[#allocation6 + $0x64] ss:$8 sps:$4 sm:$0xff]   ;;  %v1677_v5 = vld [vmem:[#allocation6 + $0x60] ss:$8 sps:$4 sm:$0xff]  }
  0x63   : > { %712 = vmatpush1.bf16.msra.mxu0 %v1674_v3  ;;  %v1678_v6 = vld [vmem:[#allocation6 + $0x54] ss:$8 sps:$4 sm:$0xff]   ;;  %v1680_v7 = vld [vmem:[#allocation6 + $0x50] ss:$8 sps:$4 sm:$0xff]   ;;  %v1681_v8 = vld [vmem:[#allocation6 + $0x44] ss:$8 sps:$4 sm:$0xff]  }
  0x64   : > { %713 = vmatprep.subr.bf16.mxu0 %v1675_v4  ;;  %v1683_v9 = vld [vmem:[#allocation6 + $0x40] ss:$8 sps:$4 sm:$0xff]   ;;  %v1684_v10 = vld [vmem:[#allocation6 + $0x34] ss:$8 sps:$4 sm:$0xff]   ;;  %v1686_v11 = vld [vmem:[#allocation6 + $0x30] ss:$8 sps:$4 sm:$0xff]  }
  0x65   : > { %v1687_v12 = vld [vmem:[#allocation6 + $0x24] ss:$8 sps:$4 sm:$0xff]   ;;  %v1689_v13 = vld [vmem:[#allocation6 + $0x20] ss:$8 sps:$4 sm:$0xff]   ;;  %v1690_v14 = vld [vmem:[#allocation6 + $0x14] ss:$8 sps:$4 sm:$0xff]  }
  0x66   : > { %v2137_v15 = vld [vmem:[%s446_s24 + $0x8] sm:$0xff]  ;;  %v1722_v20 = vld [vmem:[#allocation8 + $0x30] sm:$0xff]   ;;  %v1726_v27 = vld [vmem:[#allocation8 + $0x20] sm:$0xff]   ;;  %vm1931_vm0 = vmmov 0   ;;  %v542_v55 = vshrl.u32 %v541_v54, 7  ;;  %vm966_vm4 = vcmask 7168  }
  0x67   : > { %714 = vmatpush1.bf16.msra.mxu0 %v1677_v5  ;;  %v506_v16 = vpack.c.bf16 %v2137_v15, %v2137_v15  ;;  %v1720_v17 = vld [vmem:[#allocation8 + $0x38] sm:$0xff]   ;;  %v1693_v19 = vld [vmem:[#allocation6 + $0x4] ss:$8 sps:$4 sm:$0xff]   ;;  %v1695_v21 = vld [vmem:[#allocation6] ss:$8 sps:$4 sm:$0xff]   ;;  %1535 = vmatprep.mubr.msk.bf16.mxu1 %vm1931_vm0, %v1930_v1  ;;  %vm1296_vm5 = vcmask 1040384  }
  0x68   : > { %715 = vmatprep.subr.bf16.mxu0 %v1678_v6  ;;  %v1692_v18 = vld [vmem:[#allocation6 + $0x10] ss:$8 sps:$4 sm:$0xff]   ;;  %1520 = vmatpush3.bf16.msra.mxu1 %v1720_v17  ;;  %v1696_v22 = vld [vmem:[#allocation6 + $0xf4] ss:$8 sps:$4 sm:$0xff]   ;;  %v1699_v25 = vld [vmem:[#allocation6 + $0xe4] ss:$8 sps:$4 sm:$0xff]  }
  0x69   : > { %743 = vmatprep.mubr.bf16.mxu0 %v506_v16  ;;  %1521 = vmatprep.subr.bf16.mxu1 %v1930_v1  ;;  %v1698_v24 = vld [vmem:[#allocation6 + $0xf0] ss:$8 sps:$4 sm:$0xff]   ;;  %v1701_v26 = vld [vmem:[#allocation6 + $0xe0] ss:$8 sps:$4 sm:$0xff]   ;;  %v1702_v28 = vld [vmem:[#allocation6 + $0xd4] ss:$8 sps:$4 sm:$0xff]  }
  0x6a   : > { %v1728_v29 = vld [vmem:[#allocation8 + $0x18] sm:$0xff]   ;;  %v1705_v31 = vld [vmem:[#allocation6 + $0xc4] ss:$8 sps:$4 sm:$0xff]   ;;  %v1730_v32 = vld [vmem:[#allocation8 + $0x10] sm:$0xff]   ;;  %v2167_v56 = vsub.s32 0, %v542_v55  ;;  %v2172_v58 = vsub.s32 1, %v542_v55 }
  0x6b   : > { %716 = vmatpush1.bf16.msra.mxu0 %v1680_v7  ;;  %v1704_v30 = vld [vmem:[#allocation6 + $0xd0] ss:$8 sps:$4 sm:$0xff]   ;;  %v1707_v33 = vld [vmem:[#allocation6 + $0xc0] ss:$8 sps:$4 sm:$0xff]   ;;  %v1708_v34 = vld [vmem:[#allocation6 + $0xb4] ss:$8 sps:$4 sm:$0xff]  }
  0x6c   : > { %717 = vmatprep.subr.bf16.mxu0 %v1681_v8  ;;  %1522 = vmatpush3.bf16.msra.mxu1 %v1722_v20  ;;  %v1710_v35 = vld [vmem:[#allocation6 + $0xb0] ss:$8 sps:$4 sm:$0xff]   ;;  %v1711_v36 = vld [vmem:[#allocation6 + $0xa4] ss:$8 sps:$4 sm:$0xff]   ;;  %v1713_v37 = vld [vmem:[#allocation6 + $0xa0] ss:$8 sps:$4 sm:$0xff]  }
  0x6d   : > { %1523 = vmatprep.subr.bf16.mxu1 %v1930_v1  ;;  %v1714_v38 = vld [vmem:[#allocation6 + $0x94] ss:$8 sps:$4 sm:$0xff]   ;;  %v1716_v39 = vld [vmem:[#allocation6 + $0x90] ss:$8 sps:$4 sm:$0xff]   ;;  %v1717_v40 = vld [vmem:[#allocation6 + $0x84] ss:$8 sps:$4 sm:$0xff]  }
  0x6e   : > { %v1719_v41 = vld [vmem:[#allocation6 + $0x80] ss:$8 sps:$4 sm:$0xff]   ;;  %v1721_v44 = vld [vmem:[#allocation9 + $0x38] sm:$0xff]   ;;  %v1723_v45 = vld [vmem:[#allocation9 + $0x30] sm:$0xff]   ;;  %s1303_s28 = sld [smem:[#allocation3]]  ;;  %p499_p9 = scmp.lt.s32.totalorder %s2028_s6, 3 }
  0x6f   : > { %718 = vmatpush1.bf16.msra.mxu0 %v1683_v9  ;;  %v2149_v42 = vld [vmem:[%s446_s24] sm:$0xff]  ;;  %v1725_v46 = vld [vmem:[#allocation9 + $0x28] sm:$0xff]   ;;  %v1729_v48 = vld [vmem:[#allocation9 + $0x18] sm:$0xff]   ;;  %vm1310_vm6 = vcmask 0  }
  0x70   : > { %719 = vmatprep.subr.bf16.mxu0 %v1684_v10  ;;  %1524 = vmatpush3.bf16.msra.mxu1 %v1724_v23  ;;  %v505_v43 = vpack.c.bf16 %v2149_v42, %v2149_v42  ;;  %v1727_v47 = vld [vmem:[#allocation9 + $0x20] sm:$0xff]   ;;  %v1731_v49 = vld [vmem:[#allocation9 + $0x10] sm:$0xff]   ;;  %v1732_v50 = vld [vmem:[#allocation8 + $0x8] sm:$0xff]   ;;  %s2361_s6 = smov (!%p499_p9, %s2028_s6), 3 }
  0x71   : > { %1525 = vmatprep.subr.bf16.mxu1 %v1930_v1  ;;  %v1733_v51 = vld [vmem:[#allocation9 + $0x8] sm:$0xff]   ;;  %v1734_v52 = vld [vmem:[#allocation8] sm:$0xff]   ;;  %v888_v8 = vld [vmem:[%s2330_s5 + $0x78] sm:$0xff]  ;;  %s501_s15 = scalar_lea.vmem %s2338_s13, %s2361_s6 }
  0x72   : > { %v1735_v53 = vld [vmem:[#allocation9] sm:$0xff]   ;;  %v883_v16 = vld [vmem:[%s2330_s5 + $0x50] sm:$0xff]  ;;  %v876_v23 = vld [vmem:[%s2330_s5 + $0x18] sm:$0xff] }
  0x73   : > { %720 = vmatpush1.bf16.msra.mxu0 %v1686_v11  ;;  %v539_v57 = vld [vmem:[%s2327_s2] sm:$0x3]  ;;  %v887_v11 = vld [vmem:[%s2330_s5 + $0x70] sm:$0xff]  ;;  %v882_v17 = vld [vmem:[%s2330_s5 + $0x48] sm:$0xff] }
  0x74   : > { %721 = vmatprep.subr.bf16.mxu0 %v1687_v12  ;;  %1526 = vmatpush3.bf16.msra.mxu1 %v1726_v27  ;;  %v544_v59 = vrot.slane %v539_v57, %v2167_v56  ;;  %v548_v60 = vrot.slane %v539_v57, %v2172_v58  ;;  %v886_v12 = vld [vmem:[%s2330_s5 + $0x68] sm:$0xff]  ;;  %v879_v20 = vld [vmem:[%s2330_s5 + $0x30] sm:$0xff] }
  0x75   : > { %1527 = vmatprep.subr.bf16.mxu1 %v1930_v1  ;;  %v1738_v27 = vld [vmem:[%s2334_s9 + $0x74] ss:$8 sps:$4 sm:$0xff]   ;;  %v1751_v55 = vld [vmem:[%s2334_s9 + $0x20] ss:$8 sps:$4 sm:$0xff]  }
  0x77   : > { %722 = vmatpush1.bf16.msra.mxu0 %v1689_v13  ;;  %v885_v13 = vld [vmem:[%s2330_s5 + $0x60] sm:$0xff] }
  0x78   : > { %723 = vmatprep.subr.bf16.mxu0 %v1690_v14  ;;  %1528 = vmatpush3.bf16.msra.mxu1 %v1728_v29  ;;  %v884_v14 = vld [vmem:[%s2330_s5 + $0x58] sm:$0xff]  ;;  %v1446_v29 = vld [vmem:[%s2329_s4] ss:$0 sm:$0xff] }
  0x79   : > { %1529 = vmatprep.subr.bf16.mxu1 %v1930_v1 }
  0x7b   : > { %724 = vmatpush1.bf16.msra.mxu0 %v1692_v18  ;;  %v881_v18 = vld [vmem:[%s2330_s5 + $0x40] sm:$0xff] }
  0x7c   : > { %725 = vmatprep.subr.bf16.mxu0 %v1693_v19  ;;  %1530 = vmatpush3.bf16.msra.mxu1 %v1730_v32  ;;  %v880_v19 = vld [vmem:[%s2330_s5 + $0x38] sm:$0xff] }
  0x7d   : > { %1531 = vmatprep.subr.bf16.mxu1 %v1930_v1 }
  0x7f   : > { %726 = vmatpush1.bf16.msra.mxu0 %v1695_v21  ;;  %v878_v21 = vld [vmem:[%s2330_s5 + $0x28] sm:$0xff] }
  0x80   : > { %727 = vmatprep.subr.bf16.mxu0 %v1696_v22  ;;  %1532 = vmatpush3.bf16.msra.mxu1 %v1732_v50  ;;  %v877_v22 = vld [vmem:[%s2330_s5 + $0x20] sm:$0xff] }
  0x81   : > { %1533 = vmatprep.subr.bf16.mxu1 %v1930_v1  ;;  %v1745_v50 = vld [vmem:[%s2334_s9 + $0x40] ss:$8 sps:$4 sm:$0xff]  }
  0x83   : > { %728 = vmatpush2.bf16.msra.mxu0 %v1698_v24  ;;  %v875_v24 = vld [vmem:[%s2330_s5 + $0x10] sm:$0xff] }
  0x84   : > { %729 = vmatprep.subr.bf16.mxu0 %v1699_v25  ;;  %1534 = vmatpush3.bf16.msra.mxu1 %v1734_v52  ;;  %v874_v25 = vld [vmem:[%s2330_s5 + $0x8] sm:$0xff]  ;;  %v1748_v52 = vld [vmem:[%s2334_s9 + $0x30] ss:$8 sps:$4 sm:$0xff]  }
  0x85   : > { %1539 = vmatprep.subr.mxu1 %v1930_v1 }
  0x87   : > { %730 = vmatpush2.bf16.msra.mxu0 %v1701_v26  ;;  %v873_v26 = vld [vmem:[%s2330_s5] sm:$0xff] }
  0x88   : > { %731 = vmatprep.subr.bf16.mxu0 %v1702_v28  ;;  %v1932_v28 = vmov 0  }
  0x89   : > { %1671 = vset.pattern.permute.xlu0 %v1932_v28 }
  0x8b   : > { %732 = vmatpush2.bf16.msra.mxu0 %v1704_v30 }
  0x8c   : > { %733 = vmatprep.subr.bf16.mxu0 %v1705_v31 }
  0x8f   : > { %734 = vmatpush2.bf16.msra.mxu0 %v1707_v33 }
  0x90   : > { %735 = vmatprep.subr.bf16.mxu0 %v1708_v34 }
  0x93   : > { %736 = vmatpush2.bf16.msra.mxu0 %v1710_v35 }
  0x94   : > { %737 = vmatprep.subr.bf16.mxu0 %v1711_v36  ;;  %v1736_v36 = vld [vmem:[%s2334_s9 + $0x70] ss:$8 sps:$4 sm:$0xff]  }
  0x97   : > { %738 = vmatpush2.bf16.msra.mxu0 %v1713_v37 }
  0x98   : > { %739 = vmatprep.subr.bf16.mxu0 %v1714_v38 }
  0x9b   : > { %740 = vmatpush2.bf16.msra.mxu0 %v1716_v39  ;;  %v1741_v39 = vld [vmem:[%s2334_s9 + $0x64] ss:$8 sps:$4 sm:$0xff]  }
  0x9c   : > { %741 = vmatprep.subr.bf16.mxu0 %v1717_v40 }
  0x9f   : > { %742 = vmatpush2.bf16.msra.mxu0 %v1719_v41 }
  0xa0   : > { %1574 = vmatprep.subr.bf16.mxu0 %v1930_v1 }
  0xa2   : > { %744 = vmatmul.mubr.bf16.vlgmr.msra.gmra.mxu0 %v505_v43 }
  0xa3   : > { %1575 = vmatpush3.bf16.msra.mxu0 %v1721_v44  ;;  %1590 = vmatprep.mubr.msk.bf16.mxu0 %vm1931_vm0, %v1930_v1 }
  0xa4   : > { %1576 = vmatprep.subr.bf16.mxu0 %v1930_v1 }
  0xa7   : > { %1577 = vmatpush3.bf16.msra.mxu0 %v1723_v45  ;;  %v1739_v45 = vld [vmem:[%s2334_s9 + $0x60] ss:$8 sps:$4 sm:$0xff]  }
  0xa8   : > { %1578 = vmatprep.subr.bf16.mxu0 %v1930_v1 }
  0xab   : > { %1579 = vmatpush3.bf16.msra.mxu0 %v1725_v46 }
  0xac   : > { %1580 = vmatprep.subr.bf16.mxu0 %v1930_v1 }
  0xaf   : > { %1581 = vmatpush3.bf16.msra.mxu0 %v1727_v47  ;;  %v1744_v47 = vld [vmem:[%s2334_s9 + $0x54] ss:$8 sps:$4 sm:$0xff]  }
  0xb0   : > { %1582 = vmatprep.subr.bf16.mxu0 %v1930_v1 }
  0xb3   : > { %1583 = vmatpush3.bf16.msra.mxu0 %v1729_v48  ;;  %v1742_v48 = vld [vmem:[%s2334_s9 + $0x50] ss:$8 sps:$4 sm:$0xff]  }
  0xb4   : > { %1584 = vmatprep.subr.bf16.mxu0 %v1930_v1 }
  0xb7   : > { %1585 = vmatpush3.bf16.msra.mxu0 %v1731_v49  ;;  %v1747_v49 = vld [vmem:[%s2334_s9 + $0x44] ss:$8 sps:$4 sm:$0xff]  }
  0xb8   : > { %1586 = vmatprep.subr.bf16.mxu0 %v1930_v1 }
  0xbb   : > { %1587 = vmatpush3.bf16.msra.mxu0 %v1733_v51  ;;  %v1750_v51 = vld [vmem:[%s2334_s9 + $0x34] ss:$8 sps:$4 sm:$0xff]  }
  0xbc   : > { %1588 = vmatprep.subr.bf16.mxu0 %v1930_v1 }
  0xbf   : > { %1589 = vmatpush3.bf16.msra.mxu0 %v1735_v53  ;;  %v1753_v53 = vld [vmem:[%s2334_s9 + $0x24] ss:$8 sps:$4 sm:$0xff]  }
 0x162   : > { %v745_v61 = vpop.f32.mrf.mxu0 }
 0x163   : > { %v746_v62 = vadd.f32 %v745_v61, %v544_v59  ;;  %v1756_v59 = vld [vmem:[%s2334_s9 + $0x14] ss:$8 sps:$4 sm:$0xff]  }
 0x164   : > { %v747_v63 = vpop.f32.mrf.mxu0 }
 0x165   : > { %vm752_vm1 = vcmp.gt.f32.partialorder %v746_v62, 0.0  ;;  %v754_v0 = vmul.f32 0.01, %v746_v62  ;;  %v748_v2 = vadd.f32 %v747_v63, %v548_v60  ;;  %v1754_v60 = vld [vmem:[%s2334_s9 + $0x10] ss:$8 sps:$4 sm:$0xff]  }
 0x166   : > { %v749_v3 = vpop.f32.mrf.mxu0  ;;  %v1757_v63 = vld [vmem:[%s2334_s9] ss:$8 sps:$4 sm:$0xff]  }
 0x167   : > { %vm753_vm2 = vcmp.gt.f32.partialorder %v748_v2, 0.0  ;;  %v755_v4 = vmul.f32 0.01, %v748_v2  ;;  %v756_v5 = vsel %vm752_vm1, %v746_v62, %v754_v0  ;;  %v1759_v62 = vld [vmem:[%s2334_s9 + $0x4] ss:$8 sps:$4 sm:$0xff]  }
 0x168   : > { %v750_v6 = vpop.f32.mrf.mxu0  ;;  %v758_v7 = vpack.c.bf16 %v756_v5, %v756_v5  ;;  %v1455_v3 = vld [vmem:[#allocation2] ss:$0 sm:$0xff] }
 0x169   : > { %v757_v9 = vsel %vm753_vm2, %v748_v2, %v755_v4 }
 0x16a   : > { %v986_v10 = vpack.c.bf16 %v757_v9, %v757_v9  ;;  %1536 = vmatmul.mubr.bf16.vlgmr.msra.gmra.mxu1 %v758_v7 }
 0x16b   : > { %1540 = vmatpush3.msra.mxu1 %v888_v8  ;;  %1571 = vmatprep.mubr.msk.f32.mxu1 %vm1931_vm0, %v1930_v1 }
 0x16c   : > { %1591 = vmatmul.mubr.bf16.vlgmr.msra.gmra.mxu0 %v986_v10  ;;  %1541 = vmatprep.subr.mxu1 %v1930_v1 }
 0x16d   : > { %1542 = vmatpush3.msra.mxu1 %v887_v11 }
 0x16e   : > { %1543 = vmatprep.subr.mxu1 %v1930_v1 }
 0x16f   : > { %1544 = vmatpush3.msra.mxu1 %v886_v12 }
 0x170   : > { %1545 = vmatprep.subr.mxu1 %v1930_v1 }
 0x171   : > { %1546 = vmatpush3.msra.mxu1 %v885_v13 }
 0x172   : > { %1547 = vmatprep.subr.mxu1 %v1930_v1 }
 0x173   : > { %1548 = vmatpush3.msra.mxu1 %v884_v14 }
 0x174   : > { %1549 = vmatprep.subr.mxu1 %v1930_v1 }
 0x175   : > { %1550 = vmatpush3.msra.mxu1 %v883_v16 }
 0x176   : > { %1551 = vmatprep.subr.mxu1 %v1930_v1 }
 0x177   : > { %1552 = vmatpush3.msra.mxu1 %v882_v17 }
 0x178   : > { %1553 = vmatprep.subr.mxu1 %v1930_v1 }
 0x179   : > { %1554 = vmatpush3.msra.mxu1 %v881_v18 }
 0x17a   : > { %1555 = vmatprep.subr.mxu1 %v1930_v1 }
 0x17b   : > { %1556 = vmatpush3.msra.mxu1 %v880_v19 }
 0x17c   : > { %1557 = vmatprep.subr.mxu1 %v1930_v1 }
 0x17d   : > { %1558 = vmatpush3.msra.mxu1 %v879_v20 }
 0x17e   : > { %1559 = vmatprep.subr.mxu1 %v1930_v1 }
 0x17f   : > { %1560 = vmatpush3.msra.mxu1 %v878_v21 }
 0x180   : > { %1561 = vmatprep.subr.mxu1 %v1930_v1 }
 0x181   : > { %1562 = vmatpush3.msra.mxu1 %v877_v22 }
 0x182   : > { %1563 = vmatprep.subr.mxu1 %v1930_v1 }
 0x183   : > { %1564 = vmatpush3.msra.mxu1 %v876_v23 }
 0x184   : > { %1565 = vmatprep.subr.mxu1 %v1930_v1 }
 0x185   : > { %1566 = vmatpush3.msra.mxu1 %v875_v24 }
 0x186   : > { %1567 = vmatprep.subr.mxu1 %v1930_v1 }
 0x187   : > { %1568 = vmatpush3.msra.mxu1 %v874_v25 }
 0x188   : > { %1569 = vmatprep.subr.mxu1 %v1930_v1  ;;  %v1456_v1 = vld [vmem:[%s2333_s8] ss:$0 sm:$0xff] }
 0x189   : > { %1570 = vmatpush3.msra.mxu1 %v873_v26 }
 0x18a   : > { %1212 = vmatprep.subr.bf16.mxu1 %v1738_v27 }
 0x22a   : > { %v864_v30 = vpop.f32.mrf.mxu1 }
 0x22b   : > { %v865_v31 = vadd.f32 %v1446_v29, %v864_v30 }
 0x22c   : > { %v1537_v32 = vpop.f32.mrf.mxu1  ;;  %v1092_v33 = vpop.f32.mrf.mxu0 }
 0x22d   : > { %vm870_vm3 = vcmp.gt.f32.partialorder %v865_v31, 0.0  ;;  %v871_v34 = vmul.f32 0.01, %v865_v31  ;;  %v1093_v35 = vadd.f32 %v1456_v1, %v1092_v33  ;;  %v1120_v1 = vld [vmem:[%s2335_s10] sm:$0x3] }
 0x22e   : > { %v867_v37 = vpop.f32.mrf.mxu1  ;;  %v1592_v38 = vpop.f32.mrf.mxu0  ;;  %v1129_v32 = vrot.slane %v1120_v1, %v2172_v58 }
 0x22f   : > { %v1098_v40 = vmul.f32 0.5, %v1093_v35  ;;  %v872_v41 = vsel %vm870_vm3, %v865_v31, %v871_v34  ;;  %v1125_v31 = vrot.slane %v1120_v1, %v2167_v56 }
 0x230   : > { %v1538_v43 = vpop.f32.mrf.mxu1  ;;  %1572 = vmatmul.mubr.f32.vlgmr.msra.gmra.mxu1 %v872_v41  ;;  %v1095_v44 = vpop.f32.mrf.mxu0 }
 0x231   : > { %1213 = vmatpush1.bf16.msra.mxu1 %v1736_v36  ;;  %1244 = vmatprep.mubr.bf16.mxu1 %v1932_v28  ;;  %1760 = vtanh.f32 %v1098_v40 }
 0x232   : > { %v1593_v46 = vpop.f32.mrf.mxu0  ;;  %1214 = vmatprep.subr.bf16.mxu1 %v1741_v39 }
 0x235   : > { %1215 = vmatpush1.bf16.msra.mxu1 %v1739_v45 }
 0x236   : > { %1216 = vmatprep.subr.bf16.mxu1 %v1744_v47 }
 0x239   : > { %1217 = vmatpush1.bf16.msra.mxu1 %v1742_v48 }
 0x23a   : > { %1218 = vmatprep.subr.bf16.mxu1 %v1747_v49 }
 0x23d   : > { %1219 = vmatpush1.bf16.msra.mxu1 %v1745_v50 }
 0x23e   : > { %1220 = vmatprep.subr.bf16.mxu1 %v1750_v51  ;;  %v1761_v54 = vpop.eup %1760 }
 0x23f   : > { %v1100_v57 = vadd.f32 1.0, %v1761_v54 }
 0x241   : > { %1221 = vmatpush1.bf16.msra.mxu1 %v1748_v52  ;;  %v1101_v61 = vmul.f32 0.5, %v1100_v57 }
 0x242   : > { %1222 = vmatprep.subr.bf16.mxu1 %v1753_v53 }
 0x243   : > { %v1102_v0 = vmul.f32 %v1101_v61, %v1093_v35 }
 0x245   : > { %1223 = vmatpush1.bf16.msra.mxu1 %v1751_v55  ;;  %v1103_v2 = vpack.c.bf16 %v1102_v0, %v1102_v0  ;;  %v1282_v55 = vld [vmem:[%s2336_s11] sm:$0x3] }
 0x246   : > { %1224 = vmatprep.subr.bf16.mxu1 %v1756_v59 }
 0x249   : > { %1225 = vmatpush1.bf16.msra.mxu1 %v1754_v60 }
 0x24a   : > { %1226 = vmatprep.subr.bf16.mxu1 %v1759_v62 }
 0x24d   : > { %1227 = vmatpush1.bf16.msra.mxu1 %v1757_v63 }
 0x250   : > { %1245 = vmatmul.mubr.bf16.vlgmr.msra.gmra.mxu1 %v1103_v2 }
 0x2f0   : > { %v962_v4 = vpop.f32.mrf.mxu1 }
 0x2f1   : > { %v963_v5 = vadd.f32 %v1455_v3, %v962_v4 }
 0x2f2   : > { %v1573_v6 = vpop.f32.mrf.mxu1 }
 0x2f3   : > { %v967_v7 = vsel %vm966_vm4, %v963_v5, -inf  ;;  %v1304_v6 = vstv %s1303_s28 }
 0x2f4   : > { %v968_v8 = vrot.slane %v967_v7, 4 }
 0x2f6   : > { %v969_v9 = vmax.f32 %v967_v7, %v968_v8 }
 0x2f8   : > { %v970_v10 = vrot.slane %v969_v9, 2 }
 0x2fa   : > { %v971_v11 = vmax.f32 %v969_v9, %v970_v10 }
 0x2fc   : > { %v972_v12 = vrot.slane %v971_v11, 1 }
 0x2fe   : > { %v973_v13 = vmax.f32 %v971_v11, %v972_v12 }
 0x300   : > { %v974_v14 = vsub.f32 %v963_v5, %v973_v13 }
 0x302   : > { %v975_v16 = vmul.f32 1.442695, %v974_v14 }
 0x304   : > { %1762 = vpow2.f32 %v975_v16 }
 0x310   : > { %v1246_v17 = vpop.f32.mrf.mxu1 }
 0x311   : > { %v1763_v18 = vpop.eup %1762  ;;  %v1247_v33 = vadd.f32 %v1246_v17, %v1125_v31 }
 0x312   : > { %v977_v19 = vsel %vm966_vm4, %v1763_v18, 0.0  ;;  %v1248_v20 = vpop.f32.mrf.mxu1 }
 0x313   : > { %v978_v21 = vrot.slane %v977_v19, 4  ;;  %v1249_v34 = vadd.f32 %v1248_v20, %v1129_v32  ;;  %v1253_v35 = vmul.f32 0.5, %v1247_v33 }
 0x314   : > { %v1250_v22 = vpop.f32.mrf.mxu1 }
 0x315   : > { %v979_v23 = vadd.f32 %v978_v21, %v977_v19  ;;  %v1254_v36 = vmul.f32 0.5, %v1249_v34 }
 0x316   : > { %v1251_v24 = vpop.f32.mrf.mxu1 }
 0x317   : > { %v980_v25 = vrot.slane %v979_v23, 2 }
 0x319   : > { %v981_v26 = vadd.f32 %v980_v25, %v979_v23 }
 0x31b   : > { %v982_v27 = vrot.slane %v981_v26, 1 }
 0x31d   : > { %v983_v28 = vadd.f32 %v982_v27, %v981_v26 }
 0x31f   : > { %1764 = vrcp.f32 %v983_v28 }
 0x320   : > { %1766 = vtanh.f32 %v1253_v35 }
 0x321   : > { %1768 = vtanh.f32 %v1254_v36 }
 0x32c   : > { %v1765_v29 = vpop.eup %1764 }
 0x32d   : > { %v985_v30 = vmul.f32 %v1765_v29, %v1763_v18  ;;  %v1767_v37 = vpop.eup %1766 }
 0x32e   : > { %v1769_v38 = vpop.eup %1768  ;;  %v1257_v39 = vadd.f32 1.0, %v1767_v37 }
 0x32f   : > { %1265 = vperm.xlu0 %1671, %v985_v30   ;;  %v1258_v40 = vadd.f32 1.0, %v1769_v38 }
 0x330   : > { %v1259_v41 = vmul.f32 0.5, %v1257_v39 }
 0x331   : > { %v1260_v43 = vmul.f32 0.5, %v1258_v40 }
 0x332   : > { %v1261_v44 = vmul.f32 %v1259_v41, %v2149_v42  ;;  %v1287_v42 = vrot.slane %v1282_v55, %v2167_v56 }
 0x333   : > { %v1262_v45 = vmul.f32 %v1260_v43, %v2137_v15  ;;  %v1291_v15 = vrot.slane %v1282_v55, %v2172_v58 }
 0x3aa   : > { %v1266_v46 = vpop.permute.xlu0 %1265 }
 0x3ab   : > { %v1268_v47 = vmul.f32 %v1266_v46, %v1261_v44  ;;  %v1269_v48 = vmul.f32 %v1266_v46, %v1262_v45 }
 0x3ad   : > { %v1270_v49 = vrot.slane %v1268_v47, 4  ;;  %v1276_v50 = vrot.slane %v1269_v48, 4 }
 0x3af   : > { %v1271_v51 = vadd.f32 %v1270_v49, %v1268_v47  ;;  %v1277_v52 = vadd.f32 %v1276_v50, %v1269_v48 }
 0x3b1   : > { %v1272_v53 = vrot.slane %v1271_v51, 2  ;;  %v1278_v54 = vrot.slane %v1277_v52, 2 }
 0x3b3   : > { %v1273_v57 = vadd.f32 %v1272_v53, %v1271_v51  ;;  %v1279_v59 = vadd.f32 %v1278_v54, %v1277_v52 }
 0x3b5   : > { %v1274_v60 = vrot.slane %v1273_v57, 1  ;;  %v1280_v61 = vrot.slane %v1279_v59, 1 }
 0x3b7   : > { %v1275_v62 = vadd.f32 %v1274_v60, %v1273_v57  ;;  %v1281_v63 = vadd.f32 %v1280_v61, %v1279_v59 }
 0x3b9   : > { %v1294_v0 = vmul.f32 %v1287_v42, %v1275_v62  ;;  %v1295_v2 = vmul.f32 %v1291_v15, %v1281_v63 }
 0x3bb   : > { %v1297_v3 = vsel %vm1296_vm5, %v1294_v0, 0.0  ;;  %v1298_v4 = vsel %vm1296_vm5, %v1295_v2, 0.0 }
 0x3bc   : > { %v1299_v5 = vadd.f32 %v1298_v4, %v1297_v3 }
 0x3be   : > { %1300 = vadd.xlane.f32.xlu0 %v1299_v5 }
 0x447   : > { %v1301_v7 = vpop.xlane.xlu0 %1300 }
 0x448   : > { %v1305_v8 = vadd.f32 %v1304_v6, %v1301_v7 }
 0x44a   : > { %v1306_v9 = vmul.f32 0.5, %v1305_v8 }
 0x44c   : > { %1770 = vtanh.f32 %v1306_v9 }
 0x459   : > { %v1771_v56 = vpop.eup %1770 }
 0x45a   : > { %v1308_v58 = vadd.f32 1.0, %v1771_v56 }
 0x45c   : > { %v1309_v10 = vmul.f32 0.5, %v1308_v58 }
 0x45e   : > { %1311 = vst.msk [vmem:[%s501_s15] sm:$0x1] %vm1310_vm6, %v1309_v10 }
 0x45f PF: > { %p28_p8 = scmp.ge.s32.totalorder %s2071_s23, 6   ;;  %s2356_s29 = smov %s1912_s30 }
 0x460   : > { %s2357_s30 = smov %s1916_s14  ;;  %s2358_s14 = smov %s2089_s19 }
 0x461   : > { %s2359_s15 = smov %s2071_s23  ;;  %30 = sbr.rel (!%p28_p8) target bundleno = 9 (0x9), region = 124 }
 0x466   :  { %1329 = vsyncpa [#allocation5], 1 }
 0x467   :  { %1331 = vsyncpa [#allocation5 + $0x1], 1 }
 0x468   :  { %1332 = vsyncpa [#allocation7], 1 }
 0x469   :  { %1333 = vsyncpa [#allocation10], 1 }

</bundles_post_ra>
